<compile_context>
chip_gen: v5e
topology: v5e:2x2
jax: 0.10.0
libtpu: 0.0.40
codegen_flags: <defaults>
</compile_context>

<pallas_src>
import jax
import jax.numpy as jnp
from jax.experimental import pallas as pl
from jax.experimental.pallas import tpu as pltpu

HIDDEN = 128


def ffn_kernel(x_ref, w1_ref, b1_ref, w2_ref, b2_ref, o_ref):
    # x_ref : (TB, D)     bf16 VMEM (streamed / double-buffered)
    # w1_ref: (D, 128)    bf16 VMEM (resident across grid steps)
    # b1_ref: (1, 128)    f32  VMEM (resident)
    # w2_ref: (1, 128)    f32  VMEM (resident; second-layer weight as a row)
    # b2_ref: (1, 1)      f32  VMEM (resident)
    # o_ref : (TB, 1)     f32  VMEM
    # First linear + ReLU: bf16 operands into the MXU, f32 accumulation.
    h = jnp.dot(x_ref[...], w1_ref[...], preferred_element_type=jnp.float32)
    h = jnp.maximum(h + b1_ref[...], 0.0)

    # Second linear (128 -> 1) as VPU multiply + XLU lane reduction instead of
    # a single-column MXU matmul; then Sigmoid on the EUP.
    logit = jnp.sum(h * w2_ref[...], axis=-1, keepdims=True) + b2_ref[...]
    o_ref[...] = jax.nn.sigmoid(logit).astype(o_ref.dtype)


def _vmem_limit_bytes():
    """Scoped VMEM limit derived from the chip's physical VMEM capacity."""
    try:
        cap = pltpu.get_tpu_info().vmem_capacity_bytes
    except Exception:
        cap = 64 << 20  # conservative fallback (v7x per-TC VMEM)
    # ~5/8 of physical, capped at 64 MiB: 40 MiB on a 64 MiB part (v7x),
    # 64 MiB on 128 MiB parts (v5e/v6e) -> headroom for compiler scratch.
    return min(64 << 20, (cap * 5) // 8)


def _pick_batch_tile(B, D, vmem_limit_bytes, max_tile_rows=1024, split_rows=256):
    """Pick the batch tile TB.

    Multiple of 8 (sublane), capped at `max_tile_rows`, sized so the
    double-buffered bf16 x tile + hidden activations + double-buffered resident
    weights fit inside ~3/4 of `vmem_limit_bytes`. For B >= `split_rows` the
    tile is capped near B/2 so the grid has >= 2 steps (both v7x TCs active).
    """
    d_pad = ((max(D, 128) + 127) // 128) * 128  # lane padding for D < 128 / ragged D
    # Resident operands are still double-buffered by default even with a
    # constant index_map: w1 in bf16 + three small f32 blocks padded to (8,128).
    resident = 2 * (d_pad * HIDDEN * 2) + 3 * 2 * (8 * 128 * 4)
    # Per-row VMEM: double-buffered bf16 x row, f32 (TB,128) hidden
    # intermediate, double-buffered lane-padded (TB,1)->(TB,128) f32 out row.
    per_row = 2 * 2 * d_pad + 4 * HIDDEN + 2 * 4 * 128
    budget = (vmem_limit_bytes * 3) // 4 - resident
    tb = max(8, min(budget // per_row, max_tile_rows))
    tb = (tb // 8) * 8
    if B > tb:
        return tb
    if B >= split_rows:
        # Ensure at least 2 grid steps so both v7x TensorCores get work
        # (harmless on single-TC v5e/v6e).
        half = (((B + 1) // 2) + 7) // 8 * 8
        return min(tb, half)
    # A single block equal to the full batch dim is always legal.
    return B


def ffn_classifier(x, w1, b1, w2, b2, *, compute_dtype=jnp.bfloat16,
                   max_tile_rows=1024):
    """x: (B, D); w1: (D, 128) (pre-transposed vs torch); b1: (128,);
    w2: (128, 1); b2: (1,). Returns (B, 1) float32."""
    B, D = x.shape
    vmem_limit = _vmem_limit_bytes()
    TB = _pick_batch_tile(B, D, vmem_limit, max_tile_rows=max_tile_rows)
    grid = (pl.cdiv(B, TB),)

    # Stream x / hold w1 in the MXU's native bf16 (halves HBM bytes for the
    # dominant stream); accumulation stays f32 inside the kernel. If callers
    # already supply bf16 inputs, no extra cast pass is made.
    x_c = x if x.dtype == compute_dtype else x.astype(compute_dtype)
    w1_c = w1 if w1.dtype == compute_dtype else w1.astype(compute_dtype)
    in_bytes = jnp.dtype(compute_dtype).itemsize

    cost = pl.CostEstimate(
        flops=2 * B * D * HIDDEN + 2 * B * HIDDEN,
        transcendentals=B,  # one sigmoid per row
        bytes_accessed=(in_bytes * B * D + in_bytes * D * HIDDEN
                        + 4 * HIDDEN + 4 * HIDDEN + 4 + 4 * B),
    )

    out = pl.pallas_call(
        ffn_kernel,
        out_shape=jax.ShapeDtypeStruct((B, 1), jnp.float32),
        grid_spec=pltpu.PrefetchScalarGridSpec(
            num_scalar_prefetch=0,
            grid=grid,
            in_specs=[
                # x tiled over batch (streamed / pipelined).
                pl.BlockSpec((TB, D), lambda i: (i, 0)),
                # Weights and biases resident in VMEM across all grid steps.
                pl.BlockSpec((D, HIDDEN), lambda i: (0, 0)),
                pl.BlockSpec((1, HIDDEN), lambda i: (0, 0)),
                pl.BlockSpec((1, HIDDEN), lambda i: (0, 0)),
                pl.BlockSpec((1, 1), lambda i: (0, 0)),
            ],
            # (TB,1) output left narrow on purpose: total output traffic is
            # 4*B bytes, negligible vs the x stream.
            out_specs=pl.BlockSpec((TB, 1), lambda i: (i, 0)),
        ),
        compiler_params=pltpu.CompilerParams(
            # Independent batch tiles -> shardable across TCs (v7x megacore).
            dimension_semantics=(pltpu.PARALLEL,),
            vmem_limit_bytes=vmem_limit,
        ),
        cost_estimate=cost,
    )(
        x_c,
        w1_c,
        b1.reshape(1, HIDDEN).astype(jnp.float32),
        # (128, 1) column -> (1, 128) row; flatten order is identical.
        w2.reshape(1, HIDDEN).astype(jnp.float32),
        b2.reshape(1, 1).astype(jnp.float32),
    )
    return out


def init_params(key, input_dim):
    """Deterministic init mirroring nn.Linear's uniform(-1/sqrt(fan_in), +1/sqrt(fan_in))."""
    k1, k2, k3, k4 = jax.random.split(key, 4)
    bound1 = 1.0 / jnp.sqrt(input_dim)
    w1 = jax.random.uniform(k1, (input_dim, HIDDEN), jnp.float32, -bound1, bound1)
    b1 = jax.random.uniform(k2, (HIDDEN,), jnp.float32, -bound1, bound1)
    bound2 = 1.0 / jnp.sqrt(HIDDEN)
    w2 = jax.random.uniform(k3, (HIDDEN, 1), jnp.float32, -bound2, bound2)
    b2 = jax.random.uniform(k4, (1,), jnp.float32, -bound2, bound2)
    return w1, b1, w2, b2


def _reference_matched(x, w1, b1, w2, b2, compute_dtype=jnp.bfloat16):
    """Reference with the same bf16-operand / f32-accumulate numerics."""
    h = jnp.dot(x.astype(compute_dtype), w1.astype(compute_dtype),
                preferred_element_type=jnp.float32) + b1
    h = jnp.maximum(h, 0.0)
    return jax.nn.sigmoid(h @ w2 + b2)


def _reference_f32(x, w1, b1, w2, b2):
    return jax.nn.sigmoid(jnp.maximum(x @ w1 + b1, 0.0) @ w2 + b2)


if __name__ == "__main__":
    key = jax.random.PRNGKey(0)
    kx, kp, kx2 = jax.random.split(key, 3)

    # Small shapes consistent with the module.
    batch = 8
    input_dim = 32

    x = jax.random.normal(kx, (batch, input_dim), jnp.float32)
    w1, b1, w2, b2 = init_params(kp, input_dim)

    out = jax.block_until_ready(ffn_classifier(x, w1, b1, w2, b2))
    ref = _reference_matched(x, w1, b1, w2, b2)
    assert out.shape == (batch, 1)
    assert jnp.allclose(out, ref, atol=1e-4, rtol=1e-4)
    assert jnp.allclose(out, _reference_f32(x, w1, b1, w2, b2), atol=5e-2)

    # Second check: B >= split threshold -> multi-tile grid (>=2 steps, both
    # v7x TCs active) with a ragged last tile (B not a multiple of TB).
    batch2, input_dim2 = 300, 64
    x2 = jax.random.normal(kx2, (batch2, input_dim2), jnp.float32)
    w1b, b1b, w2b, b2b = init_params(kp, input_dim2)
    out2 = jax.block_until_ready(ffn_classifier(x2, w1b, b1b, w2b, b2b))
    ref2 = _reference_matched(x2, w1b, b1b, w2b, b2b)
    assert out2.shape == (batch2, 1)
    assert jnp.allclose(out2, ref2, atol=1e-4, rtol=1e-4)

    # Third check: force many small tiles to exercise the longer pipelined grid.
    out3 = jax.block_until_ready(
        ffn_classifier(x2, w1b, b1b, w2b, b2b, max_tile_rows=64)
    )
    assert jnp.allclose(out3, ref2, atol=1e-4, rtol=1e-4)

    print("KERNEL_OK")
</pallas_src>

<mosaic_0001>
module attributes {stable_mosaic.version = 11 : i64} {
  func.func @ffn_kernel(%arg0: i32, %arg1: memref<8x32xbf16, #tpu.memory_space<vmem>>, %arg2: memref<32x128xbf16, #tpu.memory_space<vmem>>, %arg3: memref<1x128xf32, #tpu.memory_space<vmem>>, %arg4: memref<1x128xf32, #tpu.memory_space<vmem>>, %arg5: memref<1x1xf32, #tpu.memory_space<vmem>>, %arg6: memref<8x1xf32, #tpu.memory_space<vmem>>) attributes {dimension_semantics = [#tpu.dimension_semantics<parallel>], iteration_bounds = array<i64: 1>, scalar_prefetch = 0 : i64, scratch_operands = 0 : i64, tpu.core_type = #tpu.core_type<tc>, window_params = [{transform_indices = @transform_0, window_bounds = array<i64: 8, 32>}, {pipeline_mode = #tpu.pipeline_mode<synchronous>, transform_indices = @transform_1, window_bounds = array<i64: 32, 128>}, {pipeline_mode = #tpu.pipeline_mode<synchronous>, transform_indices = @transform_2, window_bounds = array<i64: 1, 128>}, {pipeline_mode = #tpu.pipeline_mode<synchronous>, transform_indices = @transform_3, window_bounds = array<i64: 1, 128>}, {pipeline_mode = #tpu.pipeline_mode<synchronous>, transform_indices = @transform_4, window_bounds = array<i64: 1, 1>}, {transform_indices = @transform_5, window_bounds = array<i64: 8, 1>}]} {
    %c0 = arith.constant 0 : index
    %c0_0 = arith.constant 0 : index
    %0 = vector.load %arg1[%c0, %c0_0] : memref<8x32xbf16, #tpu.memory_space<vmem>>, vector<8x32xbf16>
    %c0_1 = arith.constant 0 : index
    %c0_2 = arith.constant 0 : index
    %1 = vector.load %arg2[%c0_1, %c0_2] : memref<32x128xbf16, #tpu.memory_space<vmem>>, vector<32x128xbf16>
    %cst = arith.constant dense<0.000000e+00> : vector<8x128xf32>
    %2 = tpu.matmul %0, %1, %cst {dimension_numbers = #tpu.dot_dimension_numbers<[1], [0], [0], [1], [0, 0, 1, 1], [], []>} : vector<8x32xbf16>, vector<32x128xbf16>, vector<8x128xf32> -> vector<8x128xf32>
    %c0_3 = arith.constant 0 : index
    %c0_4 = arith.constant 0 : index
    %3 = vector.load %arg3[%c0_3, %c0_4] : memref<1x128xf32, #tpu.memory_space<vmem>>, vector<1x128xf32>
    %4 = vector.broadcast %3 : vector<1x128xf32> to vector<8x128xf32>
    %5 = arith.addf %2, %4 : vector<8x128xf32>
    %cst_5 = arith.constant 0.000000e+00 : f32
    %6 = vector.broadcast %cst_5 : f32 to vector<8x128xf32>
    %7 = arith.maximumf %5, %6 : vector<8x128xf32>
    %c0_6 = arith.constant 0 : index
    %c0_7 = arith.constant 0 : index
    %8 = vector.load %arg4[%c0_6, %c0_7] : memref<1x128xf32, #tpu.memory_space<vmem>>, vector<1x128xf32>
    %9 = vector.broadcast %8 : vector<1x128xf32> to vector<8x128xf32>
    %10 = arith.mulf %7, %9 : vector<8x128xf32>
    %cst_8 = arith.constant dense<0.000000e+00> : vector<8xf32>
    %11 = vector.multi_reduction <add>, %10, %cst_8 [1] : vector<8x128xf32> to vector<8xf32>
    %12 = vector.shape_cast %11 : vector<8xf32> to vector<8x1xf32>
    %c0_9 = arith.constant 0 : index
    %c0_10 = arith.constant 0 : index
    %13 = vector.load %arg5[%c0_9, %c0_10] : memref<1x1xf32, #tpu.memory_space<vmem>>, vector<1x1xf32>
    %14 = vector.broadcast %13 : vector<1x1xf32> to vector<8x1xf32>
    %15 = arith.addf %12, %14 : vector<8x1xf32>
    %16 = arith.negf %15 : vector<8x1xf32>
    %17 = math.exp %16 : vector<8x1xf32>
    %cst_11 = arith.constant 1.000000e+00 : f32
    %18 = vector.broadcast %cst_11 : f32 to vector<8x1xf32>
    %19 = arith.addf %18, %17 : vector<8x1xf32>
    %20 = arith.divf %18, %19 : vector<8x1xf32>
    %c0_12 = arith.constant 0 : index
    %c0_13 = arith.constant 0 : index
    %21 = vector.load %arg6[%c0_12, %c0_13] : memref<8x1xf32, #tpu.memory_space<vmem>>, vector<8x1xf32>
    tpu.vector_store %arg6[%c0_12, %c0_13], %20 {strides = array<i32>} : memref<8x1xf32, #tpu.memory_space<vmem>>, vector<8x1xf32>,
    return
  }
  func.func @transform_0(%arg0: i32) -> (i32, i32) {
    %c0_i32 = arith.constant 0 : i32
    %c0_i32_0 = arith.constant 0 : i32
    return %arg0, %c0_i32 : i32, i32
  }
  func.func @transform_1(%arg0: i32) -> (i32, i32) {
    %c0_i32 = arith.constant 0 : i32
    %c0_i32_0 = arith.constant 0 : i32
    %c0_i32_1 = arith.constant 0 : i32
    return %c0_i32, %c0_i32_0 : i32, i32
  }
  func.func @transform_2(%arg0: i32) -> (i32, i32) {
    %c0_i32 = arith.constant 0 : i32
    %c0_i32_0 = arith.constant 0 : i32
    %c0_i32_1 = arith.constant 0 : i32
    return %c0_i32, %c0_i32_0 : i32, i32
  }
  func.func @transform_3(%arg0: i32) -> (i32, i32) {
    %c0_i32 = arith.constant 0 : i32
    %c0_i32_0 = arith.constant 0 : i32
    %c0_i32_1 = arith.constant 0 : i32
    return %c0_i32, %c0_i32_0 : i32, i32
  }
  func.func @transform_4(%arg0: i32) -> (i32, i32) {
    %c0_i32 = arith.constant 0 : i32
    %c0_i32_0 = arith.constant 0 : i32
    %c0_i32_1 = arith.constant 0 : i32
    return %c0_i32, %c0_i32_0 : i32, i32
  }
  func.func @transform_5(%arg0: i32) -> (i32, i32) {
    %c0_i32 = arith.constant 0 : i32
    %c0_i32_0 = arith.constant 0 : i32
    return %arg0, %c0_i32 : i32, i32
  }
}

</mosaic_0001>

<bundles_post_ra>
// kernel: tpu_custom_call.1
= control target key start
LH: loop header
LB: loop body
LE: loop exit
PB: predicated region body
PF: predicated region fallthrough
CT: control target
= control target key end

     0   :  { %s258_s0 = inlined_call_operand.hbm [shape: bf16[8,32], index: 0, kind: input, shape index: {}]   ;;  %s259_s1 = inlined_call_operand.hbm [shape: bf16[32,128], index: 1, kind: input, shape index: {}]   ;;  %s260_s2 = inlined_call_operand.vmem [shape: f32[1,128], index: 2, kind: input, shape index: {}]   ;;  %s261_s3 = inlined_call_operand.vmem [shape: f32[1,128], index: 3, kind: input, shape index: {}]   ;;  %s262_s4 = inlined_call_operand.<no memory space> [shape: f32[1,1], index: 4, kind: input, shape index: {}]   ;;  %s263_s5 = inlined_call_operand.vmem [shape: f32[8,1], index: 5, kind: output, shape index: {}]  }
   0x1   :  { %v10_v0 = vstv %s262_s4 }
   0x2   :  { %11 = vst [vmem:[#allocation2] sm:$0x1] %v10_v0 }
   0x3   :  { %12 = vsyncpa [#allocation4], 0  ;;  %s19_s22 = sshll.u32 %s258_s0, 4  ;;  %s20_s22 = int_to_ptr.hbm [resolvable:$true] %s19_s22 }
   0x4   :  { %13 = vsyncpa [#allocation6], 0  ;;  %s206_s23 = smov [#allocation3]   ;;  %s29_s27 = sshll.u32 %s259_s1, 4  ;;  %s30_s27 = int_to_ptr.hbm [resolvable:$true] %s29_s27 }
   0x5   :  { %s21_s24 = sshll.u32 %s206_s23, 4  ;;  %s207_s28 = smov [#allocation5]   ;;  %s22_s24 = int_to_ptr.vmem [resolvable:$true] %s21_s24 }
   0x6   :  { %24 = dma.hbm_to_vmem [thread:$0]  %s20_s22, 64, %s22_s24, [#allocation4]  }
   0x7   :  { %s31_s29 = sshll.u32 %s207_s28, 4  ;;  %s208_s4 = smov 64   ;;  %s32_s29 = int_to_ptr.vmem [resolvable:$true] %s31_s29 }
   0x8   :  { %s209_s30 = smov 4  }
   0x9   :  { %37 = dma.hbm_to_vmem [thread:$0]  %s30_s27, 256, %s32_s29, [#allocation6], %s208_s4, %s208_s4, %s209_s30  }
   0xa   :  { %202 = dma.done.wait [#allocation4], 64  }
   0xb   :  { %203 = vsyncadd [#allocation4], 4294967232 }
   0xc   :  { %204 = dma.done.wait [#allocation6], 256  }
   0xd   :  { %205 = vsyncadd [#allocation6], 4294967040  ;;  %v142_v1 = vld [vmem:[#allocation5 + $0x8] sm:$0xff]  ;;  %v141_v2 = vld [vmem:[#allocation5] sm:$0xff]  ;;  %vm74_vm0 = vcmask 261120   ;;  %vm123_vm4 = vcmask 7168  }
   0xe   :  { %84 = vmatpush.bf16.msra.mxu0 %v142_v1  ;;  %v53_v3 = vld [vmem:[#allocation3] sm:$0xf]  ;;  %v147_v4 = vld [vmem:[%s260_s2] ss:$0 sm:$0xff] }
   0xf   :  { %v148_v7 = vld [vmem:[%s261_s3] ss:$0 sm:$0xff] }
  0x10   :  { %v149_v11 = vld [vmem:[#allocation2] ss:$0 sm:$0xff] }
  0x12   :  { %85 = vmatpush.bf16.msra.mxu0 %v141_v2 }
  0x15   :  { %139 = vmatmul.msk.bf16.vlgmr.msra.gmra.mxu0 %vm74_vm0, %v53_v3 }
  0x92   :  { %v87_v5 = vpop.f32.mrf.mxu0 }
  0x93   :  { %v88_v6 = vadd.f32 %v147_v4, %v87_v5 }
  0x95   :  { %v91_v8 = vmax.f32 %v88_v6, 0.0 }
  0x97   :  { %v96_v9 = vmul.f32 %v148_v7, %v91_v8 }
  0x99   :  { %97 = vadd.xlane.f32.xlu0 %v96_v9 }
  0x9a   :  { %v89_v10 = vpop.f32.mrf.mxu0 }
 0x10c   :  { %v98_v12 = vpop.xlane.xlu0 %97 }
 0x10d   :  { %v103_v13 = vadd.f32 %v149_v11, %v98_v12 }
 0x10f   :  { %v140_v14 = vmul.f32 -1.442695, %v103_v13 }
 0x111   :  { %150 = vpow2.f32 %v140_v14 }
 0x117   :  { %v151_v15 = vpop.eup %150 }
 0x118   :  { %v107_v16 = vadd.f32 1.0, %v151_v15 }
 0x11a   :  { %152 = vrcp.f32 %v107_v16  ;;  %v119_v20 = vand.u32 2147483648, %v107_v16  ;;  %v117_v22 = vand.u32 2147483647, %v107_v16  ;;  %vm113_vm2 = vweird.f32 %v107_v16 }
 0x11c   :  { %v120_v24 = vor.u32 1.1754944e-38, %v119_v20  ;;  %vm118_vm5 = vcmp.eq.f32.partialorder %v117_v22, 8.507059e+37 }
 0x120   :  { %v153_v17 = vpop.eup %152 }
 0x121   :  { %v109_v18 = vmul.f32 %v153_v17, %v107_v16  ;;  %vm114_vm1 = vweird.f32 %v153_v17 }
 0x122   :  { %vm115_vm3 = vmor %vm113_vm2, %vm114_vm1 }
 0x123   :  { %v110_v19 = vsub.f32 1.0, %v109_v18 }
 0x125   :  { %v111_v21 = vmul.f32 %v153_v17, %v110_v19 }
 0x127   :  { %v112_v23 = vadd.f32 %v153_v17, %v111_v21 }
 0x129   :  { %v116_v25 = vsel %vm115_vm3, %v153_v17, %v112_v23 }
 0x12a   :  { %v121_v26 = vsel %vm118_vm5, %v120_v24, %v116_v25 }
 0x12b   :  { %124 = vst.msk [vmem:[%s263_s5] sm:$0xff] %vm123_vm4, %v121_v26 }
 0x12c   :  { %129 = vsyncpa [#allocation4], 1 }
 0x12d   :  { %130 = vsyncpa [#allocation6], 1 }

</bundles_post_ra>
